<compile_context>
chip_gen: v5e
topology: v5e:2x2
jax: 0.10.0
libtpu: 0.0.40
codegen_flags: <defaults>
</compile_context>

<pallas_src>
import numpy as np
import jax
import jax.numpy as jnp
from jax.experimental import pallas as pl
from jax.experimental.pallas import tpu as pltpu

# ---------------- hyper-parameters (small, consistent with EEGNet.__init__) -------
FS = 16                 # sampling rate -> KS1 = 8, KS2 = 4
F1 = 16
D = 2
F2 = 32
KS1 = FS // 2           # 8
KS2 = FS // 4           # 4
H = 4                   # size_2d[0]  (electrodes)
W = 64                  # size_2d[1]  (time samples)
N = 2                   # batch
EPS = 1e-5

WP = W + KS1            # 72  pre-padded width for firstconv
W1O = W + 1             # 65  width after firstconv
H2 = H - (D - 1)        # 3   height after depthwise conv
WPL1 = W1O // 4         # 16  width after AvgPool(1,4)
W2O = WPL1 + 1          # 17  width after separable depthwise conv
WPL2 = W2O // 8         # 2   width after AvgPool(1,8)
IN_FEATS = H2 * WPL2 * F2   # 192 = linear in_features
CK = D * KS1 + 1        # 17  im2col rows per example (D h-rows x KS1 taps + bias row)
PBH = WPL1 + KS2        # 20  padded pooled width per h block (2 zero gutters each side)
PBW = H2 * PBH          # 60  total pooled+padded width
SFW = PBW - (KS2 - 1)   # 57  width of the full-tile shifted-FMA result


def _elu(x):
    return jnp.where(x > 0, x, jnp.exp(jnp.minimum(x, 0.0)) - 1.0)


# ---------------------------------- kernel ----------------------------------------
def eegnet_kernel(xcol_ref, bslab_ref, fslab_ref, blin_ref, out_ref):
    f32 = jnp.float32
    nck, hw1 = xcol_ref.shape          # (n*CK, H2*W1O) = (34, 195)
    nc = fslab_ref.shape[1]            # n * D*F1 (= n*F2 here) = 64
    nb = out_ref.shape[0]              # batch

    # stage 1: firstconv + BN1 + depthwise(D,1) + BN2 folded -> ONE bf16 matmul
    # over all H2 output rows at once.
    w2 = bslab_ref[0:nc, 0:nck]                                        # (64, 34) bf16
    dw = jnp.dot(w2, xcol_ref[...], preferred_element_type=f32)        # (64, 195) f32
    act = _elu(dw)

    # stage 2: AvgPool(1,4) with the per-h zero gutters baked into the pooling
    # matrix -> a single bf16 matmul emitting the already-padded slab.
    p4 = bslab_ref[nc:nc + hw1, 0:PBW]                                 # (195, 60) bf16
    ppad = jnp.dot(act.astype(jnp.bfloat16), p4,
                   preferred_element_type=f32)                         # (64, 60) f32

    # stage 3: separable depthwise (1,KS2) as KS2 shifted FMAs on the full tile.
    # Columns that would mix h blocks are garbage but never used downstream
    # (the folded classifier weight mk is zero there).
    wsd = fslab_ref[2 * nc:3 * nc, 0:KS2]                              # (64, 4) f32
    s = wsd[:, 0:1] * ppad[:, 0:SFW]
    for j in range(1, KS2):
        s = s + wsd[:, j:j + 1] * ppad[:, j:j + SFW]                   # (64, 57)

    # stage 4: pointwise 1x1 conv (BN3 scale folded in) + BN3 shift + ELU.
    wpb = fslab_ref[0:nc, 0:nc]                                        # (64, 64) f32
    sh3 = fslab_ref[3 * nc:4 * nc, 0:1]                                # (64, 1)  f32
    z = _elu(jnp.dot(wpb, s, preferred_element_type=f32) + sh3)        # (64, 57)

    # stage 5: AvgPool(1,8) + Linear folded into mk (elementwise multiply), then
    # batch reduction: a 57-lane-wide dot with an iota-built selector followed by
    # a lane reduce (avoids a 1-lane-wide MXU result on the critical path).
    mk = fslab_ref[nc:2 * nc, 0:SFW]                                   # (64, 57) f32
    red = z * mk
    r_idx = jax.lax.broadcasted_iota(jnp.int32, (nb, nc), 1)
    b_idx = jax.lax.broadcasted_iota(jnp.int32, (nb, nc), 0)
    lo = b_idx * F2
    sel = jnp.logical_and(r_idx >= lo, r_idx < lo + F2).astype(f32)    # (2, 64)
    tmp = jnp.dot(sel, red, preferred_element_type=f32)                # (2, 57)
    out_ref[...] = jnp.sum(tmp, axis=1, keepdims=True) + blin_ref[0, 0]


# ------------------------------ parameter init -------------------------------------
def init_params(key):
    ks = jax.random.split(key, 20)
    p = {}
    p['w1'] = 0.1 * jax.random.normal(ks[0], (F1, 1, 1, KS1), jnp.float32)
    p['wd'] = 0.3 * jax.random.normal(ks[1], (D * F1, 1, D, 1), jnp.float32)
    p['wsd'] = 0.3 * jax.random.normal(ks[2], (D * F1, 1, 1, KS2), jnp.float32)
    p['wp'] = 0.2 * jax.random.normal(ks[3], (F2, D * F1, 1, 1), jnp.float32)
    p['Wlin'] = 0.1 * jax.random.normal(ks[4], (1, IN_FEATS), jnp.float32)
    p['blin'] = 0.1 * jax.random.normal(ks[5], (1,), jnp.float32)
    for i, (tag, n) in enumerate((('1', F1), ('2', D * F1), ('3', F2))):
        p['g' + tag] = 1.0 + 0.1 * jax.random.normal(ks[6 + 4 * i], (n,), jnp.float32)
        p['b' + tag] = 0.1 * jax.random.normal(ks[7 + 4 * i], (n,), jnp.float32)
        p['m' + tag] = 0.1 * jax.random.normal(ks[8 + 4 * i], (n,), jnp.float32)
        p['v' + tag] = 0.5 + jax.random.uniform(ks[9 + 4 * i], (n,), jnp.float32)
    return p


def _fold_bn(g, b, m, v):
    scale = g / jnp.sqrt(v + EPS)
    return scale, b - m * scale


# --------------------- host-side weight folding (ONCE per weight set) --------------
def fold_params(p, n):
    """Parameter-only folding, hoisted out of the per-forward path."""
    assert F2 == D * F1  # slab layout assumes equal row counts for both stages
    f32 = jnp.float32
    sc1, sh1 = _fold_bn(p['g1'], p['b1'], p['m1'], p['v1'])   # (F1,)
    sc2, sh2 = _fold_bn(p['g2'], p['b2'], p['m2'], p['v2'])   # (2F1,)
    sc3, sh3 = _fold_bn(p['g3'], p['b3'], p['m3'], p['v3'])   # (F2,)

    w1 = p['w1'].reshape(F1, KS1)
    wd = p['wd'].reshape(D * F1, D)
    wsd = p['wsd'].reshape(D * F1, KS2)
    wp = p['wp'].reshape(F2, D * F1)
    wlin = p['Wlin'].reshape(F2, H2, WPL2)

    rep = jnp.arange(D * F1) // D          # depthwise out channel c -> in channel c//D
    nc = n * D * F1                        # 64

    # fold firstconv + BN1 + depthwise(D,1) + BN2 into one weight per channel row
    a_dh = [sc2 * wd[:, dh] * sc1[rep] for dh in range(D)]              # each (2F1,)
    b2 = sc2 * wd.sum(axis=1) * sh1[rep] + sh2                          # (2F1,)
    w1rep = w1[rep]                                                     # (2F1, KS1)
    wcomb = jnp.concatenate([a[:, None] * w1rep for a in a_dh] + [b2[:, None]],
                            axis=1)                                     # (2F1, CK)
    # TODO(synk): kron block-diagonals are O(n^2); fine at n=2, replace with a
    #             batch grid axis if n grows.
    w2blk = jnp.kron(jnp.eye(n, dtype=f32), wcomb)                      # (nc, n*CK)

    # AvgPool(1,4) as a block-diagonal-over-h matmul with zero gutters baked in
    pcore = ((jnp.arange(4 * WPL1)[:, None] // 4)
             == jnp.arange(WPL1)[None, :]).astype(f32) / 4.0            # (64, 16)
    pblk = jnp.zeros((W1O, PBH), f32).at[:4 * WPL1,
                                         KS2 // 2:KS2 // 2 + WPL1].set(pcore)
    p4_all = jnp.kron(jnp.eye(H2, dtype=f32), pblk)                     # (195, 60)

    # pointwise 1x1 with BN3 scale folded in, block-diagonal over the batch
    wpb = jnp.kron(jnp.eye(n, dtype=f32), sc3[:, None] * wp)            # (n*F2, nc)
    sh3t = jnp.tile(sh3, (n,)).reshape(n * F2, 1)
    wsd_t = jnp.tile(wsd, (n, 1))                                       # (nc, KS2)

    # AvgPool(1,8) + Linear folded; laid out in the gutter-padded (PBH) geometry
    m = jnp.zeros((F2, H2, PBH), f32).at[:, :, :8 * WPL2].set(
        jnp.repeat(wlin, 8, axis=2) / 8.0)
    mk = jnp.tile(m.reshape(F2, PBW), (n, 1))[:, :SFW]                  # (n*F2, 57)

    def lanes(a, width):
        return jnp.pad(a, ((0, 0), (0, width - a.shape[1])))

    # bf16 slab: MXU operands (quantize AFTER folding, in f32, then cast)
    bslab = jnp.concatenate([lanes(w2blk, PBW), p4_all],
                            axis=0).astype(jnp.bfloat16)                # (nc+195, 60)
    # f32 slab: VPU / small-MXU operands, 64-lane wide, sublane-aligned blocks
    fslab = jnp.concatenate([lanes(wpb, nc), lanes(mk, nc),
                             lanes(wsd_t, nc), lanes(sh3t, nc)],
                            axis=0)                                     # (4*nc, nc)
    blin = p['blin'].reshape(1, 1).astype(f32)
    return bslab, fslab, blin


# ------------------------- per-call input packing + launch -------------------------
def build_xcol(x):
    """x-dependent im2col of the time-padded input, all H2 rows along lanes."""
    n = x.shape[0]
    xpad = jnp.pad(x[:, 0], ((0, 0), (0, 0), (KS1 // 2, KS1 // 2)))     # (n, H, WP)
    gk = jnp.arange(KS1)[:, None] + jnp.arange(W1O)[None, :]            # (KS1, W1O)
    cols = [xpad[:, dh:dh + H2, :][:, :, gk] for dh in range(D)]        # (n, H2, KS1, W1O)
    cols.append(jnp.ones((n, H2, 1, W1O), x.dtype))                     # bias row
    xcol = jnp.concatenate(cols, axis=2)                                # (n, H2, CK, W1O)
    xcol = jnp.transpose(xcol, (0, 2, 1, 3)).reshape(n * CK, H2 * W1O)  # (n*CK, 195)
    return xcol.astype(jnp.bfloat16)


@jax.jit
def eegnet_forward(x, bslab, fslab, blin):
    xcol = build_xcol(x)
    n = x.shape[0]
    vmem = pltpu.MemorySpace.VMEM
    out = pl.pallas_call(
        eegnet_kernel,
        out_shape=jax.ShapeDtypeStruct((n, 1), jnp.float32),
        in_specs=[pl.BlockSpec(memory_space=vmem),                       # xcol (per call)
                  pl.BlockSpec(memory_space=vmem),                       # bf16 weight slab
                  pl.BlockSpec(memory_space=vmem),                       # f32 weight slab
                  pl.BlockSpec(memory_space=pltpu.MemorySpace.SMEM)],    # linear bias
        out_specs=pl.BlockSpec(memory_space=vmem),
    )(xcol, bslab, fslab, blin)
    return out.reshape(-1)


# --------------------------- pure-JAX reference -------------------------------------
def reference_forward(x, p):
    dn = ('NCHW', 'OIHW', 'NCHW')
    hp = jax.lax.Precision.HIGHEST

    def bn(y, g, b, m, v):
        return ((y - m[None, :, None, None]) / jnp.sqrt(v + EPS)[None, :, None, None]
                * g[None, :, None, None] + b[None, :, None, None])

    def pool_w(y, k):
        wtr = (y.shape[-1] // k) * k
        return y[..., :wtr].reshape(y.shape[0], y.shape[1], y.shape[2], wtr // k, k).mean(-1)

    y = jax.lax.conv_general_dilated(x, p['w1'], (1, 1), [(0, 0), (KS1 // 2, KS1 // 2)],
                                     dimension_numbers=dn, precision=hp)
    y = bn(y, p['g1'], p['b1'], p['m1'], p['v1'])
    y = jax.lax.conv_general_dilated(y, p['wd'], (1, 1), [(0, 0), (0, 0)],
                                     dimension_numbers=dn, feature_group_count=F1, precision=hp)
    y = _elu(bn(y, p['g2'], p['b2'], p['m2'], p['v2']))
    y = pool_w(y, 4)
    y = jax.lax.conv_general_dilated(y, p['wsd'], (1, 1), [(0, 0), (KS2 // 2, KS2 // 2)],
                                     dimension_numbers=dn, feature_group_count=D * F1, precision=hp)
    y = jax.lax.conv_general_dilated(y, p['wp'], (1, 1), [(0, 0), (0, 0)],
                                     dimension_numbers=dn, precision=hp)
    y = _elu(bn(y, p['g3'], p['b3'], p['m3'], p['v3']))
    y = pool_w(y, 8)
    y = y.reshape(y.shape[0], -1)
    y = y @ p['Wlin'].T + p['blin']
    return y.reshape(-1)


if __name__ == "__main__":
    key = jax.random.PRNGKey(0)
    kx, kp = jax.random.split(key)
    x = jax.random.normal(kx, (N, 1, H, W), jnp.float32)   # NCHW, C=1
    params = init_params(kp)

    folded = fold_params(params, N)        # parameter-only folding, once per weight set
    out = eegnet_forward(x, *folded)
    out = jax.block_until_ready(out)

    ref = reference_forward(x, params)
    np.testing.assert_allclose(np.asarray(out), np.asarray(ref), rtol=2e-2, atol=1e-2)
    print("KERNEL_OK")
</pallas_src>

<mosaic_0001>
module attributes {stable_mosaic.version = 11 : i64} {
  func.func @eegnet_kernel(%arg0: memref<34x195xbf16, #tpu.memory_space<vmem>>, %arg1: memref<259x60xbf16, #tpu.memory_space<vmem>>, %arg2: memref<256x64xf32, #tpu.memory_space<vmem>>, %arg3: memref<1x1xf32, #tpu.memory_space<smem>>, %arg4: memref<2x1xf32, #tpu.memory_space<vmem>>) attributes {dimension_semantics = [], scalar_prefetch = 0 : i64, scratch_operands = 0 : i64, tpu.core_type = #tpu.core_type<tc>} {
    %c0 = arith.constant 0 : index
    %c0_0 = arith.constant 0 : index
    %0 = vector.load %arg1[%c0, %c0_0] : memref<259x60xbf16, #tpu.memory_space<vmem>>, vector<64x34xbf16>
    %c0_1 = arith.constant 0 : index
    %c0_2 = arith.constant 0 : index
    %1 = vector.load %arg0[%c0_1, %c0_2] : memref<34x195xbf16, #tpu.memory_space<vmem>>, vector<34x195xbf16>
    %cst = arith.constant dense<0.000000e+00> : vector<64x195xf32>
    %2 = tpu.matmul %0, %1, %cst {dimension_numbers = #tpu.dot_dimension_numbers<[1], [0], [0], [1], [0, 0, 1, 1], [], []>} : vector<64x34xbf16>, vector<34x195xbf16>, vector<64x195xf32> -> vector<64x195xf32>
    %cst_3 = arith.constant 0.000000e+00 : f32
    %3 = vector.broadcast %cst_3 : f32 to vector<64x195xf32>
    %4 = arith.cmpf ogt, %2, %3 : vector<64x195xf32>
    %cst_4 = arith.constant 0.000000e+00 : f32
    %5 = vector.broadcast %cst_4 : f32 to vector<64x195xf32>
    %6 = arith.minimumf %2, %5 : vector<64x195xf32>
    %7 = math.exp %6 : vector<64x195xf32>
    %cst_5 = arith.constant 1.000000e+00 : f32
    %8 = vector.broadcast %cst_5 : f32 to vector<64x195xf32>
    %9 = arith.subf %7, %8 : vector<64x195xf32>
    %10 = arith.select %4, %2, %9 : vector<64x195xi1>, vector<64x195xf32>
    %c64 = arith.constant 64 : index
    %c0_6 = arith.constant 0 : index
    %11 = vector.load %arg1[%c64, %c0_6] : memref<259x60xbf16, #tpu.memory_space<vmem>>, vector<195x60xbf16>
    %12 = arith.truncf %10 : vector<64x195xf32> to vector<64x195xbf16>
    %cst_7 = arith.constant dense<0.000000e+00> : vector<64x60xf32>
    %13 = tpu.matmul %12, %11, %cst_7 {dimension_numbers = #tpu.dot_dimension_numbers<[1], [0], [0], [1], [0, 0, 1, 1], [], []>} : vector<64x195xbf16>, vector<195x60xbf16>, vector<64x60xf32> -> vector<64x60xf32>
    %c128 = arith.constant 128 : index
    %c0_8 = arith.constant 0 : index
    %14 = vector.load %arg2[%c128, %c0_8] : memref<256x64xf32, #tpu.memory_space<vmem>>, vector<64x4xf32>
    %15 = vector.extract_strided_slice %14 {offsets = [0, 0], sizes = [64, 1], strides = [1, 1]} : vector<64x4xf32> to vector<64x1xf32>
    %16 = vector.extract_strided_slice %13 {offsets = [0, 0], sizes = [64, 57], strides = [1, 1]} : vector<64x60xf32> to vector<64x57xf32>
    %17 = vector.broadcast %15 : vector<64x1xf32> to vector<64x57xf32>
    %18 = arith.mulf %17, %16 : vector<64x57xf32>
    %19 = vector.extract_strided_slice %14 {offsets = [0, 1], sizes = [64, 1], strides = [1, 1]} : vector<64x4xf32> to vector<64x1xf32>
    %20 = vector.extract_strided_slice %13 {offsets = [0, 1], sizes = [64, 57], strides = [1, 1]} : vector<64x60xf32> to vector<64x57xf32>
    %21 = vector.broadcast %19 : vector<64x1xf32> to vector<64x57xf32>
    %22 = arith.mulf %21, %20 : vector<64x57xf32>
    %23 = arith.addf %18, %22 : vector<64x57xf32>
    %24 = vector.extract_strided_slice %14 {offsets = [0, 2], sizes = [64, 1], strides = [1, 1]} : vector<64x4xf32> to vector<64x1xf32>
    %25 = vector.extract_strided_slice %13 {offsets = [0, 2], sizes = [64, 57], strides = [1, 1]} : vector<64x60xf32> to vector<64x57xf32>
    %26 = vector.broadcast %24 : vector<64x1xf32> to vector<64x57xf32>
    %27 = arith.mulf %26, %25 : vector<64x57xf32>
    %28 = arith.addf %23, %27 : vector<64x57xf32>
    %29 = vector.extract_strided_slice %14 {offsets = [0, 3], sizes = [64, 1], strides = [1, 1]} : vector<64x4xf32> to vector<64x1xf32>
    %30 = vector.extract_strided_slice %13 {offsets = [0, 3], sizes = [64, 57], strides = [1, 1]} : vector<64x60xf32> to vector<64x57xf32>
    %31 = vector.broadcast %29 : vector<64x1xf32> to vector<64x57xf32>
    %32 = arith.mulf %31, %30 : vector<64x57xf32>
    %33 = arith.addf %28, %32 : vector<64x57xf32>
    %c0_9 = arith.constant 0 : index
    %c0_10 = arith.constant 0 : index
    %34 = vector.load %arg2[%c0_9, %c0_10] : memref<256x64xf32, #tpu.memory_space<vmem>>, vector<64x64xf32>
    %c192 = arith.constant 192 : index
    %c0_11 = arith.constant 0 : index
    %35 = vector.load %arg2[%c192, %c0_11] : memref<256x64xf32, #tpu.memory_space<vmem>>, vector<64x1xf32>
    %cst_12 = arith.constant dense<0.000000e+00> : vector<64x57xf32>
    %36 = tpu.matmul %34, %33, %cst_12 {dimension_numbers = #tpu.dot_dimension_numbers<[1], [0], [0], [1], [0, 0, 1, 1], [], []>} : vector<64x64xf32>, vector<64x57xf32>, vector<64x57xf32> -> vector<64x57xf32>
    %37 = vector.broadcast %35 : vector<64x1xf32> to vector<64x57xf32>
    %38 = arith.addf %36, %37 : vector<64x57xf32>
    %cst_13 = arith.constant 0.000000e+00 : f32
    %39 = vector.broadcast %cst_13 : f32 to vector<64x57xf32>
    %40 = arith.cmpf ogt, %38, %39 : vector<64x57xf32>
    %cst_14 = arith.constant 0.000000e+00 : f32
    %41 = vector.broadcast %cst_14 : f32 to vector<64x57xf32>
    %42 = arith.minimumf %38, %41 : vector<64x57xf32>
    %43 = math.exp %42 : vector<64x57xf32>
    %cst_15 = arith.constant 1.000000e+00 : f32
    %44 = vector.broadcast %cst_15 : f32 to vector<64x57xf32>
    %45 = arith.subf %43, %44 : vector<64x57xf32>
    %46 = arith.select %40, %38, %45 : vector<64x57xi1>, vector<64x57xf32>
    %c64_16 = arith.constant 64 : index
    %c0_17 = arith.constant 0 : index
    %47 = vector.load %arg2[%c64_16, %c0_17] : memref<256x64xf32, #tpu.memory_space<vmem>>, vector<64x57xf32>
    %48 = arith.mulf %46, %47 : vector<64x57xf32>
    %49 = tpu.iota {dimensions = array<i32: 1>} : vector<2x64xi32>
    %50 = tpu.iota {dimensions = array<i32: 0>} : vector<2x64xi32>
    %c32_i32 = arith.constant 32 : i32
    %51 = vector.broadcast %c32_i32 : i32 to vector<2x64xi32>
    %52 = arith.muli %50, %51 : vector<2x64xi32>
    %53 = arith.cmpi sge, %49, %52 : vector<2x64xi32>
    %c32_i32_18 = arith.constant 32 : i32
    %54 = vector.broadcast %c32_i32_18 : i32 to vector<2x64xi32>
    %55 = arith.addi %52, %54 : vector<2x64xi32>
    %56 = arith.cmpi slt, %49, %55 : vector<2x64xi32>
    %57 = arith.andi %53, %56 : vector<2x64xi1>
    %58 = arith.extui %57 : vector<2x64xi1> to vector<2x64xi32>
    %59 = arith.sitofp %58 : vector<2x64xi32> to vector<2x64xf32>
    %cst_19 = arith.constant dense<0.000000e+00> : vector<2x57xf32>
    %60 = tpu.matmul %59, %48, %cst_19 {dimension_numbers = #tpu.dot_dimension_numbers<[1], [0], [0], [1], [0, 0, 1, 1], [], []>} : vector<2x64xf32>, vector<64x57xf32>, vector<2x57xf32> -> vector<2x57xf32>
    %cst_20 = arith.constant dense<0.000000e+00> : vector<2xf32>
    %61 = vector.multi_reduction <add>, %60, %cst_20 [1] : vector<2x57xf32> to vector<2xf32>
    %62 = vector.shape_cast %61 : vector<2xf32> to vector<2x1xf32>
    %c0_21 = arith.constant 0 : index
    %c0_22 = arith.constant 0 : index
    %63 = memref.load %arg3[%c0_21, %c0_22] : memref<1x1xf32, #tpu.memory_space<smem>>
    %64 = vector.broadcast %63 : f32 to vector<2x1xf32>
    %65 = arith.addf %62, %64 : vector<2x1xf32>
    %c0_23 = arith.constant 0 : index
    %c0_24 = arith.constant 0 : index
    %66 = vector.load %arg4[%c0_23, %c0_24] : memref<2x1xf32, #tpu.memory_space<vmem>>, vector<2x1xf32>
    tpu.vector_store %arg4[%c0_23, %c0_24], %65 {strides = array<i32>} : memref<2x1xf32, #tpu.memory_space<vmem>>, vector<2x1xf32>,
    return
  }
}

</mosaic_0001>

<bundles_post_ra>
// kernel: eegnet_forward.1
= control target key start
LH: loop header
LB: loop body
LE: loop exit
PB: predicated region body
PF: predicated region fallthrough
CT: control target
= control target key end

     0   :  { %vm90_vm0 = vcmask 1040384   ;;  %vm77_vm1 = vcmask 277504   ;;  %v1193_v25 = vmov 1   ;;  %v1194_v31 = vmov 2   ;;  %s1199_s29 = smov 126   ;;  %s1200_s30 = smov 125   ;;  %s1603_s0 = inlined_call_operand.vmem [shape: bf16[34,195], index: 0, kind: input, shape index: {}]   ;;  %s1604_s1 = inlined_call_operand.vmem [shape: bf16[259,60], index: 1, kind: input, shape index: {}]   ;;  %s1605_s2 = inlined_call_operand.vmem [shape: f32[256,64], index: 2, kind: input, shape index: {}]   ;;  %s1606_s3 = inlined_call_operand.<no memory space> [shape: f32[1,1], index: 3, kind: input, shape index: {}]   ;;  %s1607_s4 = inlined_call_operand.vmem [shape: f32[2,1], index: 4, kind: output, shape index: {}]  }
   0x1   :  { %v31_v0 = vld [vmem:[%s1603_s0 + $0x20] sm:$0x11]  ;;  %v991_v3 = vld [vmem:[%s1603_s0 + $0x10] sm:$0xf]  ;;  %v1098_v4 = vld [vmem:[%s1603_s0 + $0x14] sm:$0xf0]  ;;  %1134 = vset.pattern.permute.xlu0 %v1193_v25  ;;  %1135 = vset.pattern.permute.xlu1 %v1194_v31 }
   0x2   :  { %v65_v1 = vunpack.c.l.b16 %v31_v0  ;;  %v66_v5 = vunpack.c.h.b16 %v31_v0  ;;  %v992_v7 = vor.u32 %v1098_v4, %v991_v3  ;;  %v983_v8 = vld [vmem:[%s1603_s0] sm:$0xf]  ;;  %v1096_v9 = vld [vmem:[%s1603_s0 + $0x4] sm:$0xf0]  ;;  %v1097_v13 = vld [vmem:[%s1603_s0 + $0x14] sm:$0xf]  ;;  %1137 = vset.pattern.permute.xlu2 %v1194_v31 }
   0x3   :  { %v984_v11 = vor.u32 %v1096_v9, %v983_v8  ;;  %v993_v14 = vld [vmem:[%s1603_s0 + $0x18] sm:$0xf0]  ;;  %v1091_v15 = vld [vmem:[%s1604_s1] sm:$0xff]  ;;  %v1093_v16 = vld [vmem:[%s1604_s1 + $0x10] sm:$0xff]  ;;  %v1195_v40 = vmov 3   ;;  %vm372_vm2 = vcmask 1041408  }
   0x4   :  { %v71_v2 = vpack.c.b16 %v65_v1, %v65_v1  ;;  %v72_v10 = vpack.c.b16 %v66_v5, %v66_v5  ;;  %v996_v17 = vor.u32 %v1097_v13, %v993_v14  ;;  %v1095_v18 = vld [vmem:[%s1603_s0 + $0x4] sm:$0xf]  ;;  %v985_v19 = vld [vmem:[%s1603_s0 + $0x8] sm:$0xf0]  ;;  %v1094_v20 = vld [vmem:[%s1604_s1 + $0x18] sm:$0xff]  ;;  %v1196_v42 = vmov 65535  }
   0x5   :  { %v988_v21 = vor.u32 %v1095_v18, %v985_v19  ;;  %v1092_v22 = vld [vmem:[%s1604_s1 + $0x8] sm:$0xff]  ;;  %v1277_v23 = vld [vmem:[%s1605_s2 + $0xb8] sm:$0xff]  ;;  %v1105_v26 = vld [vmem:[%s1604_s1 + $0x50] sm:$0xff]  ;;  %v373_v43 = vsel %vm90_vm0, 4294967295, %v1196_v42  ;;  %v1197_v5 = vmov 0   ;;  %vm359_vm7 = vcmask 547840  }
   0x6   :  { %v92_v6 = vsel %vm90_vm0, %v71_v2, 0  ;;  %v95_v12 = vsel %vm90_vm0, %v72_v10, 0  ;;  %v1106_v24 = vld [vmem:[%s1604_s1 + $0x58] sm:$0xff]  ;;  %521 = vperm.xlu0 %1134, %v1277_v23   ;;  %v1289_v27 = vld [vmem:[%s1605_s2 + $0xb0] sm:$0xff]  ;;  %v1104_v28 = vld [vmem:[%s1604_s1 + $0x48] sm:$0xff]  ;;  %601 = vperm.xlu1 %1135, %v1277_v23   ;;  %v374_v44 = vsel %vm372_vm2, %v373_v43, 0 }
   0x7   :  { %102 = vmatpush.bf16.msra.mxu0 %v92_v6  ;;  %1111 = vmatpush.bf16.msra.mxu1 %v92_v6  ;;  %v1300_v29 = vld [vmem:[%s1605_s2 + $0xa0] sm:$0xff]  ;;  %v1102_v32 = vld [vmem:[%s1604_s1 + $0x38] sm:$0xff]  ;;  %v1101_v34 = vld [vmem:[%s1604_s1 + $0x30] sm:$0xff] }
   0x8   :  { %1112 = vmatpush.bf16.msra.mxu3 %v92_v6  ;;  %378 = vmatpush.bf16.msra.mxu2 %v1106_v24  ;;  %v1103_v30 = vld [vmem:[%s1604_s1 + $0x40] sm:$0xff]  ;;  %v1314_v33 = vld [vmem:[%s1605_s2 + $0x98] sm:$0xff]  ;;  %v1326_v36 = vld [vmem:[%s1605_s2 + $0xa8] sm:$0xff] }
   0x9   :  { %597 = vperm.xlu2 %1137, %v1289_v27   ;;  %v275_v35 = vld [vmem:[%s1604_s1 + $0x80] sm:$0x3]  ;;  %v1100_v37 = vld [vmem:[%s1604_s1 + $0x28] sm:$0xff]  ;;  %v1335_v39 = vld [vmem:[%s1605_s2 + $0x90] sm:$0xff] }
   0xa   :  { %v333_v38 = vunpack.c.l.b16 %v275_v35  ;;  %v1099_v45 = vld [vmem:[%s1604_s1 + $0x20] sm:$0xff]  ;;  %v1110_v47 = vld [vmem:[%s1604_s1 + $0x78] sm:$0xff]  ;;  %v1350_v48 = vld [vmem:[%s1605_s2 + $0x88] sm:$0xff] }
   0xb   :  { %103 = vmatpush.bf16.msra.mxu0 %v992_v7  ;;  %1113 = vmatpush.bf16.msra.mxu1 %v992_v7  ;;  %v1109_v49 = vld [vmem:[%s1604_s1 + $0x70] sm:$0xff]  ;;  %v1108_v53 = vld [vmem:[%s1604_s1 + $0x68] sm:$0xff]  ;;  %v1366_v54 = vld [vmem:[%s1605_s2 + $0x80] sm:$0xff] }
   0xc   :  { %1114 = vmatpush.bf16.msra.mxu3 %v992_v7  ;;  %379 = vmatpush.bf16.msra.mxu2 %v1105_v26  ;;  %v346_v41 = vpack.c.b16 %v333_v38, %v333_v38  ;;  %v1107_v56 = vld [vmem:[%s1604_s1 + $0x60] sm:$0xff]  ;;  %s1198_s1 = smov 127  }
   0xe   :  { %517 = vperm.xlu0 %1134, %v1289_v27   ;;  %1136 = vset.pattern.permute.xlu1 %v1193_v25  ;;  %v376_v46 = vand.u32 %v374_v44, %v346_v41 }
   0xf   :  { %104 = vmatpush.bf16.msra.mxu0 %v984_v11  ;;  %1115 = vmatpush.bf16.msra.mxu1 %v984_v11 }
  0x10   :  { %1116 = vmatpush.bf16.msra.mxu3 %v984_v11  ;;  %380 = vmatpush.bf16.msra.mxu2 %v1104_v28 }
  0x11   :  { %513 = vperm.xlu1 %1136, %v1326_v36   ;;  %1138 = vset.pattern.permute.xlu2 %v1195_v40 }
  0x12   :  { %997 = vmatmul.msk.bf16.vlgmr.msra.gmra.mxu0 %vm77_vm1, %v1091_v15  ;;  %999 = vmatmul.msk.bf16.vlgmr.msra.gmra.mxu1 %vm77_vm1, %v1093_v16 }
  0x13   :  { %131 = vmatpush.bf16.msrb.mxu1 %v95_v12  ;;  %1000 = vmatmul.msk.bf16.vlgmr.msra.gmra.mxu3 %vm77_vm1, %v1094_v20 }
  0x14   :  { %381 = vmatpush.bf16.msra.mxu2 %v1103_v30  ;;  %681 = vperm.xlu2 %1138, %v1277_v23  }
  0x15   :  { %410 = vmatpush.bf16.msrb.mxu3 %v376_v46 }
  0x16   :  { %509 = vperm.xlu0 %1134, %v1300_v29  }
  0x17   :  { %132 = vmatpush.bf16.msrb.mxu1 %v996_v17 }
  0x18   :  { %382 = vmatpush.bf16.msra.mxu2 %v1102_v32 }
  0x19   :  { %1139 = vset.pattern.permute.xlu1 %v1194_v31  ;;  %411 = vmatpush.bf16.msrb.mxu3 %v1110_v47 }
  0x1a   :  { %593 = vperm.xlu1 %1139, %v1326_v36  }
  0x1b   :  { %133 = vmatpush.bf16.msrb.mxu1 %v988_v21 }
  0x1c   :  { %383 = vmatpush.bf16.msra.mxu2 %v1101_v34  ;;  %677 = vperm.xlu2 %1138, %v1289_v27  }
  0x1d   :  { %412 = vmatpush.bf16.msrb.mxu3 %v1109_v49 }
  0x1e   :  { %505 = vperm.xlu0 %1134, %v1314_v33  }
  0x20   :  { %384 = vmatpush.bf16.msra.mxu2 %v1100_v37 }
  0x21   :  { %413 = vmatpush.bf16.msrb.mxu3 %v1108_v53 }
  0x22   :  { %998 = vmatmul.msk.bf16.gmra.mxu0 %vm77_vm1, %v1092_v22  ;;  %1001 = vmatmul.msk.bf16.vlgmr.msrb.gmra.mxu1 %vm77_vm1, %v1091_v15 }
  0x23   :  { %589 = vperm.xlu1 %1139, %v1300_v29  }
  0x24   :  { %385 = vmatpush.bf16.msra.mxu2 %v1099_v45  ;;  %673 = vperm.xlu2 %1138, %v1326_v36  }
  0x25   :  { %414 = vmatpush.bf16.msrb.mxu3 %v1107_v56 }
  0x26   :  { %501 = vperm.xlu0 %1134, %v1335_v39  }
  0x2b   :  { %585 = vperm.xlu1 %1139, %v1314_v33  }
  0x2c   :  { %669 = vperm.xlu2 %1138, %v1300_v29  }
  0x2e   :  { %497 = vperm.xlu0 %1134, %v1350_v48  }
  0x32   :  { %1002 = vmatmul.msk.bf16.gmra.mxu1 %vm77_vm1, %v1092_v22 }
  0x33   :  { %581 = vperm.xlu1 %1139, %v1335_v39  }
  0x34   :  { %665 = vperm.xlu2 %1138, %v1314_v33  }
  0x36   :  { %493 = vperm.xlu0 %1134, %v1366_v54  }
  0x3b   :  { %577 = vperm.xlu1 %1139, %v1350_v48  }
  0x3c   :  { %661 = vperm.xlu2 %1138, %v1335_v39  }
  0x3e   :  { %1140 = vset.pattern.permute.xlu0 %v1194_v31 }
  0x3f   :  { %573 = vperm.xlu0 %1140, %v1366_v54  }
  0x42   :  { %1003 = vmatmul.msk.bf16.gmra.mxu1 %vm77_vm1, %v1093_v16 }
  0x43   :  { %1141 = vset.pattern.permute.xlu1 %v1195_v40 }
  0x44   :  { %657 = vperm.xlu1 %1141, %v1350_v48   ;;  %653 = vperm.xlu2 %1138, %v1366_v54  }
  0x47   :  { %1144 = vset.pattern.permute.xlu0 %v1197_v5 }
  0x48   :  { %456 = vperm.xlu0 %1144, %v1335_v39  }
  0x4c   :  { %1142 = vset.pattern.permute.xlu1 %v1197_v5  ;;  %1143 = vset.pattern.permute.xlu2 %v1197_v5 }
  0x4d   :  { %481 = vperm.xlu1 %1142, %v1277_v23   ;;  %476 = vperm.xlu2 %1143, %v1289_v27  }
  0x50   :  { %446 = vperm.xlu0 %1144, %v1366_v54  }
  0x52   :  { %1004 = vmatmul.msk.bf16.gmra.mxu1 %vm77_vm1, %v1094_v20 }
  0x55   :  { %471 = vperm.xlu1 %1142, %v1326_v36   ;;  %461 = vperm.xlu2 %1143, %v1314_v33  }
  0x5d   :  { %466 = vperm.xlu1 %1142, %v1300_v29   ;;  %451 = vperm.xlu2 %1143, %v1350_v48  }
  0x8f   :  { %v106_v50 = vpop.f32.mrf.mxu0  ;;  %v1358_v51 = vpop.f32.mrf.mxu1 }
  0x90   :  { %v171_v52 = vmin.f32 %v106_v50, 0.0  ;;  %vm155_vm3 = vcmp.gt.f32.partialorder %v106_v50, 0.0  ;;  %v179_v20 = vmin.f32 %v1358_v51, 0.0  ;;  %vm163_vm11 = vcmp.gt.f32.partialorder %v1358_v51, 0.0 }
  0x92   :  { %v187_v55 = vmul.f32 1.442695, %v171_v52  ;;  %v203_v32 = vmul.f32 1.442695, %v179_v20 }
  0x94   :  { %1145 = vpow2.f32 %v187_v55 }
  0x96   :  { %v1390_v25 = vpop.f32.mrf.mxu3 }
  0x97   :  { %v108_v57 = vpop.f32.mrf.mxu0  ;;  %v1374_v58 = vpop.f32.mrf.mxu1  ;;  %v183_v52 = vmin.f32 %v1390_v25, 0.0  ;;  %vm167_vm14 = vcmp.gt.f32.partialorder %v1390_v25, 0.0 }
  0x98   :  { %v173_v59 = vmin.f32 %v108_v57, 0.0  ;;  %vm157_vm4 = vcmp.gt.f32.partialorder %v108_v57, 0.0  ;;  %v181_v18 = vmin.f32 %v1374_v58, 0.0  ;;  %vm165_vm10 = vcmp.gt.f32.partialorder %v1374_v58, 0.0 }
  0x9a   :  { %v191_v60 = vmul.f32 1.442695, %v173_v59  ;;  %v1146_v61 = vpop.eup %1145  ;;  %v207_v28 = vmul.f32 1.442695, %v181_v18 }
  0x9b   :  { %v1005_v1 = vadd.f32 -1.0, %v1146_v61  ;;  %v211_v61 = vmul.f32 1.442695, %v183_v52 }
  0x9c   :  { %1147 = vpow2.f32 %v191_v60 }
  0x9d   :  { %v235_v8 = vsel %vm155_vm3, %v106_v50, %v1005_v1 }
  0x9e   :  { %v123_v47 = vpop.f32.mrf.mxu3 }
  0x9f   :  { %v111_v62 = vpop.f32.mrf.mxu0  ;;  %v135_v63 = vpop.f32.mrf.mxu1  ;;  %v185_v54 = vmin.f32 %v123_v47, 0.0  ;;  %vm169_vm15 = vcmp.gt.f32.partialorder %v123_v47, 0.0 }
  0xa0   :  { %v175_v0 = vmin.f32 %v111_v62, 0.0  ;;  %v172_v2 = vmin.f32 %v135_v63, 0.0  ;;  %vm159_vm5 = vcmp.gt.f32.partialorder %v111_v62, 0.0  ;;  %vm156_vm8 = vcmp.gt.f32.partialorder %v135_v63, 0.0 }
  0xa2   :  { %v1148_v3 = vpop.eup %1147  ;;  %v195_v6 = vmul.f32 1.442695, %v175_v0  ;;  %v189_v7 = vmul.f32 1.442695, %v172_v2 }
  0xa3   :  { %v1007_v4 = vadd.f32 -1.0, %v1148_v3 }
  0xa4   :  { %1149 = vpow2.f32 %v195_v6 }
  0xa5   :  { %v237_v9 = vsel %vm157_vm4, %v108_v57, %v1007_v4  ;;  %1151 = vpow2.f32 %v189_v7  ;;  %vm788_vm4 = vcmask 523264  }
  0xa6   :  { %v276_v10 = vpack.c.bf16 %v237_v9, %v235_v8 }
  0xa7   :  { %v113_v11 = vpop.f32.mrf.mxu0  ;;  %v137_v12 = vpop.f32.mrf.mxu1 }
  0xa8   :  { %v177_v13 = vmin.f32 %v113_v11, 0.0  ;;  %v174_v14 = vmin.f32 %v137_v12, 0.0  ;;  %386 = vmatmul.bf16.vlgmr.msra.gmra.mxu2 %v276_v10  ;;  %vm161_vm6 = vcmp.gt.f32.partialorder %v113_v11, 0.0  ;;  %vm158_vm9 = vcmp.gt.f32.partialorder %v137_v12, 0.0 }
  0xaa   :  { %v199_v15 = vmul.f32 1.442695, %v177_v13  ;;  %v193_v16 = vmul.f32 1.442695, %v174_v14  ;;  %v1150_v17 = vpop.eup %1149 }
  0xab   :  { %v1152_v19 = vpop.eup %1151  ;;  %v1009_v24 = vadd.f32 -1.0, %v1150_v17 }
  0xac   :  { %1153 = vpow2.f32 %v199_v15  ;;  %v1006_v30 = vadd.f32 -1.0, %v1152_v19 }
  0xad   :  { %1155 = vpow2.f32 %v193_v16  ;;  %v239_v38 = vsel %vm159_vm5, %v111_v62, %v1009_v24 }
  0xae   :  { %1157 = vpow2.f32 %v207_v28  ;;  %v236_v41 = vsel %vm156_vm8, %v135_v63, %v1006_v30  ;;  %v215_v63 = vmul.f32 1.442695, %v185_v54 }
  0xaf   :  { %v1387_v21 = vpop.f32.mrf.mxu1  ;;  %1159 = vpow2.f32 %v203_v32 }
  0xb0   :  { %v176_v22 = vmin.f32 %v1387_v21, 0.0  ;;  %vm160_vm12 = vcmp.gt.f32.partialorder %v1387_v21, 0.0 }
  0xb2   :  { %v1154_v26 = vpop.eup %1153  ;;  %v197_v37 = vmul.f32 1.442695, %v176_v22 }
  0xb3   :  { %v1156_v31 = vpop.eup %1155  ;;  %v1011_v34 = vadd.f32 -1.0, %v1154_v26 }
  0xb4   :  { %v1008_v35 = vadd.f32 -1.0, %v1156_v31  ;;  %1161 = vpow2.f32 %v197_v37  ;;  %v1158_v49 = vpop.eup %1157  ;;  %v1418_v37 = vpop.permute.xlu2 %597 }
  0xb5   :  { %v241_v39 = vsel %vm161_vm6, %v113_v11, %v1011_v34  ;;  %v1160_v50 = vpop.eup %1159  ;;  %v1015_v55 = vadd.f32 -1.0, %v1158_v49  ;;  %v1414_v34 = vpop.permute.xlu0 %521 }
  0xb6   :  { %v238_v42 = vsel %vm158_vm9, %v137_v12, %v1008_v35  ;;  %v278_v43 = vpack.c.bf16 %v241_v39, %v239_v38  ;;  %v1013_v59 = vadd.f32 -1.0, %v1160_v50  ;;  %v1416_v35 = vpop.permute.xlu1 %601 }
  0xb7   :  { %v277_v40 = vpack.c.bf16 %v238_v42, %v236_v41  ;;  %v142_v44 = vpop.f32.mrf.mxu1  ;;  %v245_v23 = vsel %vm165_vm10, %v1374_v58, %v1015_v55 }
  0xb8   :  { %v178_v45 = vmin.f32 %v142_v44, 0.0  ;;  %391 = vmatmul.bf16.gmra.mxu2 %v278_v43  ;;  %vm162_vm13 = vcmp.gt.f32.partialorder %v142_v44, 0.0  ;;  %v243_v3 = vsel %vm163_vm11, %v1358_v51, %v1013_v59 }
  0xb9   :  { %1069 = vmatmul.msk.bf16.vlgmr.msrb.gmra.mxu3 %vm359_vm7, %v277_v40  ;;  %v280_v4 = vpack.c.bf16 %v245_v23, %v243_v3 }
  0xba   :  { %v201_v46 = vmul.f32 1.442695, %v178_v45  ;;  %v1162_v53 = vpop.eup %1161 }
  0xbb   :  { %v1010_v60 = vadd.f32 -1.0, %v1162_v53 }
  0xbc   :  { %1163 = vpow2.f32 %v201_v46  ;;  %v1422_v41 = vpop.permute.xlu2 %681 }
  0xbd   :  { %v240_v1 = vsel %vm160_vm12, %v1387_v21, %v1010_v60  ;;  %1165 = vpow2.f32 %v211_v61  ;;  %v1420_v38 = vpop.permute.xlu0 %517 }
  0xbe   :  { %1167 = vpow2.f32 %v215_v63  ;;  %v514_v39 = vpop.permute.xlu1 %513 }
  0xbf   :  { %v145_v56 = vpop.f32.mrf.mxu1 }
  0xc0   :  { %v180_v57 = vmin.f32 %v145_v56, 0.0  ;;  %vm164_vm0 = vcmp.gt.f32.partialorder %v145_v56, 0.0 }
  0xc2   :  { %v1164_v62 = vpop.eup %1163  ;;  %v205_v27 = vmul.f32 1.442695, %v180_v57 }
  0xc3   :  { %v1012_v0 = vadd.f32 -1.0, %v1164_v62  ;;  %v1166_v8 = vpop.eup %1165 }
  0xc4   :  { %1169 = vpow2.f32 %v205_v27  ;;  %v1168_v36 = vpop.eup %1167  ;;  %v1017_v9 = vadd.f32 -1.0, %v1166_v8 }
  0xc5   :  { %v242_v2 = vsel %vm162_vm13, %v142_v44, %v1012_v0  ;;  %v1019_v51 = vadd.f32 -1.0, %v1168_v36  ;;  %v510_v42 = vpop.permute.xlu0 %509  ;;  %v1424_v44 = vpop.permute.xlu2 %677 }
  0xc6   :  { %v279_v5 = vpack.c.bf16 %v242_v2, %v240_v1  ;;  %v247_v15 = vsel %vm167_vm14, %v1390_v25, %v1017_v9  ;;  %v594_v40 = vpop.permute.xlu1 %593 }
  0xc7   :  { %v147_v58 = vpop.f32.mrf.mxu1  ;;  %v249_v16 = vsel %vm169_vm15, %v123_v47, %v1019_v51 }
  0xc8   :  { %v182_v6 = vmin.f32 %v147_v58, 0.0  ;;  %396 = vmatmul.bf16.gmra.mxu2 %v280_v4  ;;  %vm166_vm1 = vcmp.gt.f32.partialorder %v147_v58, 0.0  ;;  %v282_v48 = vpack.c.bf16 %v249_v16, %v247_v15 }
  0xc9   :  { %1070 = vmatmul.msk.bf16.gmra.mxu3 %vm359_vm7, %v279_v5 }
  0xca   :  { %v209_v7 = vmul.f32 1.442695, %v182_v6  ;;  %v1170_v33 = vpop.eup %1169 }
  0xcb   :  { %v1014_v12 = vadd.f32 -1.0, %v1170_v33 }
  0xcc   :  { %1171 = vpow2.f32 %v209_v7 }
  0xcd   :  { %v244_v29 = vsel %vm164_vm0, %v145_v56, %v1014_v12  ;;  %v506_v45 = vpop.permute.xlu0 %505  ;;  %v674_v49 = vpop.permute.xlu2 %673  ;;  %vm952_vm0 = vcmask 459776  }
  0xce   :  { %v590_v47 = vpop.permute.xlu1 %589 }
  0xcf   :  { %v150_v10 = vpop.f32.mrf.mxu1 }
  0xd0   :  { %v184_v11 = vmin.f32 %v150_v10, 0.0  ;;  %vm168_vm2 = vcmp.gt.f32.partialorder %v150_v10, 0.0 }
  0xd2   :  { %v1172_v13 = vpop.eup %1171  ;;  %v213_v17 = vmul.f32 1.442695, %v184_v11 }
  0xd3   :  { %v1016_v14 = vadd.f32 -1.0, %v1172_v13 }
  0xd4   :  { %1173 = vpow2.f32 %v213_v17 }
  0xd5   :  { %v246_v18 = vsel %vm166_vm1, %v147_v58, %v1016_v14  ;;  %v502_v50 = vpop.permute.xlu0 %501  ;;  %v670_v59 = vpop.permute.xlu2 %669  ;;  %vm959_vm1 = vcmask 1024  }
  0xd6   :  { %v281_v19 = vpack.c.bf16 %v246_v18, %v244_v29  ;;  %v586_v55 = vpop.permute.xlu1 %585 }
  0xd7   :  { %v152_v20 = vpop.f32.mrf.mxu1 }
  0xd8   :  { %v186_v21 = vmin.f32 %v152_v20, 0.0  ;;  %401 = vmatmul.bf16.gmra.mxu2 %v282_v48  ;;  %vm170_vm3 = vcmp.gt.f32.partialorder %v152_v20, 0.0 }
  0xd9   :  { %1071 = vmatmul.msk.bf16.gmra.mxu3 %vm359_vm7, %v281_v19 }
  0xda   :  { %v217_v22 = vmul.f32 1.442695, %v186_v21  ;;  %v1174_v24 = vpop.eup %1173 }
  0xdb   :  { %v1018_v26 = vadd.f32 -1.0, %v1174_v24 }
  0xdc   :  { %1175 = vpow2.f32 %v217_v22 }
  0xdd   :  { %v248_v30 = vsel %vm168_vm2, %v150_v10, %v1018_v26  ;;  %v498_v60 = vpop.permute.xlu0 %497  ;;  %v666_v2 = vpop.permute.xlu2 %665 }
  0xde   :  { %v582_v23 = vpop.permute.xlu1 %581 }
  0xe2   :  { %v1176_v28 = vpop.eup %1175 }
  0xe3   :  { %v1020_v25 = vadd.f32 -1.0, %v1176_v28 }
  0xe5   :  { %v250_v31 = vsel %vm170_vm3, %v152_v20, %v1020_v25  ;;  %v662_v7 = vpop.permute.xlu2 %661 }
  0xe6   :  { %v283_v32 = vpack.c.bf16 %v250_v31, %v248_v30  ;;  %v494_v31 = vpop.permute.xlu0 %493 }
  0xe9   :  { %1072 = vmatmul.msk.bf16.gmra.mxu3 %vm359_vm7, %v283_v32 }
  0xed   :  { %v654_v11 = vpop.permute.xlu2 %653 }
  0xf5   :  { %v477_v18 = vpop.permute.xlu2 %476 }
 0x12b   :  { %v387_v43 = vpop.f32.mrf.mxu2 }
 0x133   :  { %v389_v46 = vpop.f32.mrf.mxu2 }
 0x13b   :  { %v392_v54 = vpop.f32.mrf.mxu2 }
 0x13c   :  { %v416_v52 = vpop.f32.mrf.mxu3 }
 0x13d   :  { %v1426_v53 = vadd.f32 %v416_v52, %v387_v43  ;;  %v743_v52 = vld [vmem:[%s1605_s2 + $0xd8] sm:$0xff] }
 0x13f   :  { %v524_v32 = vmul.f32 %v494_v31, %v1426_v53 }
 0x143   :  { %v394_v62 = vpop.f32.mrf.mxu2 }
 0x144   :  { %v418_v56 = vpop.f32.mrf.mxu3 }
 0x145   :  { %v1428_v57 = vadd.f32 %v418_v56, %v389_v46  ;;  %v744_v46 = vld [vmem:[%s1605_s2 + $0xe0] sm:$0xff] }
 0x147   :  { %v525_v61 = vmul.f32 %v498_v60, %v1428_v57 }
 0x149   :  { %542 = vrot.lane.b32.xlu1 %v525_v61, %s1198_s1 }
 0x14b   :  { %v397_v5 = vpop.f32.mrf.mxu2 }
 0x14c   :  { %v421_v63 = vpop.f32.mrf.mxu3 }
 0x14d   :  { %v1432_v0 = vadd.f32 %v421_v63, %v392_v54  ;;  %v742_v54 = vld [vmem:[%s1605_s2 + $0xd0] sm:$0xff] }
 0x14f   :  { %v606_v27 = vmul.f32 %v582_v23, %v1432_v0  ;;  %v526_v1 = vmul.f32 %v502_v50, %v1432_v0  ;;  %v686_v43 = vmul.f32 %v662_v7, %v1432_v0  ;;  %v741_v50 = vld [vmem:[%s1605_s2 + $0xc8] sm:$0xff] }
 0x151   :  { %624 = vrot.lane.b32.xlu2 %v606_v27, %s1199_s29  ;;  %544 = vrot.lane.b32.xlu0 %v526_v1, %s1198_s1 }
 0x153   :  { %v399_v10 = vpop.f32.mrf.mxu2 }
 0x154   :  { %v423_v3 = vpop.f32.mrf.mxu3 }
 0x155   :  { %v1438_v4 = vadd.f32 %v423_v3, %v394_v62 }
 0x157   :  { %v527_v58 = vmul.f32 %v506_v45, %v1438_v4  ;;  %v687_v6 = vmul.f32 %v666_v2, %v1438_v4  ;;  %v607_v33 = vmul.f32 %v586_v55, %v1438_v4  ;;  %v684_v45 = vmul.f32 %v654_v11, %v1426_v53  ;;  %v740_v55 = vld [vmem:[%s1605_s2 + $0xc0] sm:$0xff] }
 0x159   :  { %546 = vrot.lane.b32.xlu1 %v527_v58, %s1198_s1  ;;  %706 = vrot.lane.b32.xlu0 %v687_v6, %s1200_s30 }
 0x15b   :  { %v402_v16 = vpop.f32.mrf.mxu2 }
 0x15c   :  { %v426_v8 = vpop.f32.mrf.mxu3 }
 0x15d   :  { %v1444_v36 = vadd.f32 %v426_v8, %v397_v5 }
 0x15f   :  { %v608_v9 = vmul.f32 %v590_v47, %v1444_v36  ;;  %v528_v51 = vmul.f32 %v510_v42, %v1444_v36  ;;  %v688_v15 = vmul.f32 %v670_v59, %v1444_v36  ;;  %v746_v47 = vld [vmem:[%s1605_s2 + $0xf0] sm:$0xff]  ;;  %v462_v59 = vpop.permute.xlu2 %461 }
 0x161   :  { %626 = vrot.lane.b32.xlu1 %v607_v33, %s1199_s29  ;;  %628 = vrot.lane.b32.xlu2 %v608_v9, %s1199_s29 }
 0x162   :  { %548 = vrot.lane.b32.xlu0 %v528_v51, %s1198_s1 }
 0x163   :  { %v404_v22 = vpop.f32.mrf.mxu2 }
 0x164   :  { %v428_v12 = vpop.f32.mrf.mxu3 }
 0x165   :  { %v1452_v13 = vadd.f32 %v428_v12, %v399_v10 }
 0x167   :  { %v609_v14 = vmul.f32 %v594_v40, %v1452_v13  ;;  %v689_v48 = vmul.f32 %v674_v49, %v1452_v13  ;;  %v529_v19 = vmul.f32 %v514_v39, %v1452_v13  ;;  %v747_v40 = vld [vmem:[%s1605_s2 + $0xf8] sm:$0xff]  ;;  %v745_v49 = vld [vmem:[%s1605_s2 + $0xe8] sm:$0xff]  ;;  %v452_v61 = vpop.permute.xlu2 %451 }
 0x169   :  { %630 = vrot.lane.b32.xlu1 %v609_v14, %s1199_s29  ;;  %708 = vrot.lane.b32.xlu2 %v688_v15, %s1200_s30 }
 0x16c   :  { %v431_v17 = vpop.f32.mrf.mxu3 }
 0x16d   :  { %v432_v29 = vadd.f32 %v431_v17, %v402_v16 }
 0x16f   :  { %v610_v20 = vmul.f32 %v1418_v37, %v432_v29  ;;  %v1461_v21 = vmul.f32 %v477_v18, %v432_v29  ;;  %v530_v30 = vmul.f32 %v1420_v38, %v432_v29  ;;  %v690_v37 = vmul.f32 %v1424_v44, %v432_v29  ;;  %v574_v38 = vpop.permute.xlu0 %573 }
 0x171   :  { %710 = vrot.lane.b32.xlu1 %v689_v48, %s1200_s30  ;;  %550 = vrot.lane.b32.xlu2 %v529_v19, %s1198_s1 }
 0x172   :  { %632 = vrot.lane.b32.xlu0 %v610_v20, %s1199_s29 }
 0x174   :  { %v433_v24 = vpop.f32.mrf.mxu3 }
 0x175   :  { %v1466_v26 = vadd.f32 %v433_v24, %v404_v22 }
 0x177   :  { %v691_v28 = vmul.f32 %v1422_v41, %v1466_v26  ;;  %v531_v25 = vmul.f32 %v1414_v34, %v1466_v26  ;;  %v611_v39 = vmul.f32 %v1416_v35, %v1466_v26  ;;  %v578_v34 = vpop.permute.xlu1 %577  ;;  %v604_v41 = vmul.f32 %v574_v38, %v1426_v53  ;;  %v457_v62 = vpop.permute.xlu0 %456 }
 0x178   :  { %v605_v42 = vmul.f32 %v578_v34, %v1428_v57 }
 0x179   :  { %714 = vrot.lane.b32.xlu1 %v691_v28, %s1200_s30  ;;  %552 = vrot.lane.b32.xlu2 %v530_v30, %s1198_s1  ;;  %v487_v28 = vmul.f32 %v462_v59, %v1438_v4  ;;  %v485_v4 = vmul.f32 %v452_v61, %v1428_v57  ;;  %v734_v59 = vld [vmem:[%s1605_s2 + $0x10] sm:$0xff]  ;;  %v736_v61 = vld [vmem:[%s1605_s2 + $0x20] sm:$0xff] }
 0x17a   :  { %554 = vrot.lane.b32.xlu0 %v531_v25, %s1198_s1 }
 0x17f   :  { %v658_v35 = vpop.permute.xlu1 %657  ;;  %v447_v27 = vpop.permute.xlu0 %446 }
 0x180   :  { %v685_v44 = vmul.f32 %v658_v35, %v1428_v57 }
 0x181   :  { %540 = vrot.lane.b32.xlu1 %v524_v32, %s1198_s1  ;;  %712 = vrot.lane.b32.xlu2 %v690_v37, %s1200_s30  ;;  %v486_v37 = vmul.f32 %v457_v62, %v1432_v0  ;;  %v737_v62 = vld [vmem:[%s1605_s2 + $0x28] sm:$0xff] }
 0x182   :  { %634 = vrot.lane.b32.xlu0 %v611_v39, %s1199_s29 }
 0x187   :  { %v482_v56 = vpop.permute.xlu1 %481 }
 0x188   :  { %v491_v16 = vmul.f32 %v482_v56, %v1466_v26  ;;  %v733_v56 = vld [vmem:[%s1605_s2 + $0x8] sm:$0xff] }
 0x189   :  { %620 = vrot.lane.b32.xlu1 %v604_v41, %s1199_s29  ;;  %622 = vrot.lane.b32.xlu2 %v605_v42, %s1199_s29 }
 0x18a   :  { %704 = vrot.lane.b32.xlu0 %v686_v43, %s1200_s30  ;;  %v484_v43 = vmul.f32 %v447_v27, %v1426_v53  ;;  %v732_v53 = vld [vmem:[%s1605_s2] sm:$0xff] }
 0x18f   :  { %v472_v60 = vpop.permute.xlu1 %471 }
 0x190   :  { %v489_v19 = vmul.f32 %v472_v60, %v1452_v13  ;;  %v735_v60 = vld [vmem:[%s1605_s2 + $0x18] sm:$0xff] }
 0x191   :  { %785 = vperm.xlu1 %1142, %v747_v40   ;;  %702 = vrot.lane.b32.xlu2 %v685_v44, %s1200_s30 }
 0x192   :  { %700 = vrot.lane.b32.xlu0 %v684_v45, %s1200_s30 }
 0x197   :  { %v467_v63 = vpop.permute.xlu1 %466 }
 0x198   :  { %v488_v17 = vmul.f32 %v467_v63, %v1444_v36  ;;  %v738_v63 = vld [vmem:[%s1605_s2 + $0x30] sm:$0xff] }
 0x199   :  { %770 = vperm.xlu1 %1142, %v744_v46   ;;  %780 = vperm.xlu2 %1143, %v746_v47  }
 0x19a   :  { %775 = vperm.xlu0 %1144, %v745_v49  }
 0x1a1   :  { %755 = vperm.xlu1 %1142, %v741_v50   ;;  %765 = vperm.xlu2 %1143, %v743_v52  }
 0x1a2   :  { %760 = vperm.xlu0 %1144, %v742_v54  }
 0x1a9   :  { %750 = vperm.xlu2 %1143, %v740_v55   ;;  %v739_v55 = vld [vmem:[%s1605_s2 + $0x38] sm:$0xff] }
 0x1ab   :  { %v625_v23 = vpop.permute.xlu2 %624 }
 0x1bb   :  { %v543_v1 = vpop.permute.xlu1 %542  ;;  %v629_v2 = vpop.permute.xlu2 %628 }
 0x1bc   :  { %v565_v0 = vadd.f32 %v543_v1, %v485_v4 }
 0x1c3   :  { %v545_v3 = vpop.permute.xlu0 %544  ;;  %v709_v58 = vpop.permute.xlu2 %708 }
 0x1c4   :  { %v566_v34 = vadd.f32 %v545_v3, %v486_v37 }
 0x1c6   :  { %v646_v35 = vadd.f32 %v625_v23, %v566_v34 }
 0x1cb   :  { %v547_v5 = vpop.permute.xlu1 %546  ;;  %v707_v6 = vpop.permute.xlu0 %706 }
 0x1cc   :  { %v551_v8 = vpop.permute.xlu2 %550  ;;  %v567_v26 = vadd.f32 %v547_v5, %v487_v28 }
 0x1cd   :  { %v569_v31 = vadd.f32 %v551_v8, %v489_v19 }
 0x1d3   :  { %v627_v7 = vpop.permute.xlu1 %626 }
 0x1d4   :  { %v549_v9 = vpop.permute.xlu0 %548  ;;  %v553_v51 = vpop.permute.xlu2 %552  ;;  %v647_v38 = vadd.f32 %v627_v7, %v567_v26 }
 0x1d5   :  { %v570_v29 = vadd.f32 %v553_v51, %v1461_v21  ;;  %v568_v20 = vadd.f32 %v549_v9, %v488_v17 }
 0x1d6   :  { %v727_v40 = vadd.f32 %v707_v6, %v647_v38 }
 0x1d7   :  { %v648_v39 = vadd.f32 %v629_v2, %v568_v20 }
 0x1d9   :  { %v728_v42 = vadd.f32 %v709_v58, %v648_v39 }
 0x1db   :  { %v631_v33 = vpop.permute.xlu1 %630 }
 0x1dc   :  { %v713_v12 = vpop.permute.xlu2 %712  ;;  %v649_v36 = vadd.f32 %v631_v33, %v569_v31  ;;  %v909_v33 = vld [vmem:[%s1605_s2 + $0x78] sm:$0xff] }
 0x1e3   :  { %v711_v10 = vpop.permute.xlu1 %710 }
 0x1e4   :  { %v633_v11 = vpop.permute.xlu0 %632  ;;  %v623_v25 = vpop.permute.xlu2 %622  ;;  %v729_v13 = vadd.f32 %v711_v10, %v649_v36 }
 0x1e5   :  { %v650_v22 = vadd.f32 %v633_v11, %v570_v29  ;;  %v645_v46 = vadd.f32 %v623_v25, %v565_v0  ;;  %v918_v0 = vlaneseq }
 0x1e7   :  { %v730_v21 = vadd.f32 %v713_v12, %v650_v22 }
 0x1eb   :  { %v715_v14 = vpop.permute.xlu1 %714 }
 0x1ec   :  { %v555_v15 = vpop.permute.xlu0 %554  ;;  %v703_v44 = vpop.permute.xlu2 %702 }
 0x1ed   :  { %v571_v18 = vadd.f32 %v555_v15, %v491_v16  ;;  %v725_v50 = vadd.f32 %v703_v44, %v645_v46 }
 0x1f3   :  { %v541_v30 = vpop.permute.xlu1 %540 }
 0x1f4   :  { %v635_v48 = vpop.permute.xlu0 %634  ;;  %v564_v47 = vadd.f32 %v541_v30, %v484_v43  ;;  %v781_v11 = vpop.permute.xlu2 %780 }
 0x1f5   :  { %v651_v24 = vadd.f32 %v635_v48, %v571_v18 }
 0x1f7   :  { %v731_v32 = vadd.f32 %v715_v14, %v651_v24 }
 0x1f9   :  { %821 = vmatpush.msrb.mxu0 %v731_v32  ;;  %1117 = vmatpush.msrb.mxu2 %v731_v32 }
 0x1fb   :  { %822 = vmatpush.msrb.mxu0 %v730_v21  ;;  %1118 = vmatpush.msrb.mxu2 %v730_v21  ;;  %v621_v45 = vpop.permute.xlu1 %620 }
 0x1fc   :  { %v705_v41 = vpop.permute.xlu0 %704  ;;  %v644_v52 = vadd.f32 %v621_v45, %v564_v47  ;;  %v766_v16 = vpop.permute.xlu2 %765  ;;  %v921_v45 = vshrl.u32 %v918_v0, 7 }
 0x1fd   :  { %823 = vmatpush.msrb.mxu0 %v729_v13  ;;  %1119 = vmatpush.msrb.mxu2 %v729_v13  ;;  %v726_v49 = vadd.f32 %v705_v41, %v646_v35 }
 0x1ff   :  { %824 = vmatpush.msrb.mxu0 %v728_v42  ;;  %1120 = vmatpush.msrb.mxu2 %v728_v42 }
 0x201   :  { %825 = vmatpush.msrb.mxu0 %v727_v40  ;;  %1121 = vmatpush.msrb.mxu2 %v727_v40 }
 0x203   :  { %826 = vmatpush.msrb.mxu0 %v726_v49  ;;  %1122 = vmatpush.msrb.mxu2 %v726_v49  ;;  %v786_v27 = vpop.permute.xlu1 %785 }
 0x204   :  { %v701_v57 = vpop.permute.xlu0 %700  ;;  %v751_v32 = vpop.permute.xlu2 %750 }
 0x205   :  { %v724_v54 = vadd.f32 %v701_v57, %v644_v52  ;;  %827 = vmatpush.msrb.mxu0 %v725_v50  ;;  %1123 = vmatpush.msrb.mxu2 %v725_v50  ;;  %v908_v57 = vld [vmem:[%s1605_s2 + $0x70] sm:$0xff] }
 0x207   :  { %828 = vmatpush.msrb.mxu0 %v724_v54  ;;  %1124 = vmatpush.msrb.mxu2 %v724_v54 }
 0x208   :  { %1073 = vmatmul.msk.f32.vlgmr.msrb.gmra.mxu0 %vm788_vm4, %v732_v53  ;;  %1080 = vmatmul.msk.f32.vlgmr.msrb.gmra.mxu2 %vm788_vm4, %v739_v55  ;;  %v922_v53 = vmul.u32 32, %v921_v45 }
 0x20b   :  { %v771_v15 = vpop.permute.xlu1 %770 }
 0x20c   :  { %v776_v14 = vpop.permute.xlu0 %775 }
 0x210   :  { %1074 = vmatmul.msk.f32.gmra.mxu0 %vm788_vm4, %v733_v56 }
 0x213   :  { %v756_v28 = vpop.permute.xlu1 %755 }
 0x214   :  { %v761_v20 = vpop.permute.xlu0 %760 }
 0x218   :  { %1075 = vmatmul.msk.f32.gmra.mxu0 %vm788_vm4, %v734_v59 }
 0x220   :  { %1076 = vmatmul.msk.f32.gmra.mxu0 %vm788_vm4, %v735_v60  ;;  %v907_v60 = vld [vmem:[%s1605_s2 + $0x68] sm:$0xff] }
 0x228   :  { %1077 = vmatmul.msk.f32.gmra.mxu0 %vm788_vm4, %v736_v61 }
 0x230   :  { %1078 = vmatmul.msk.f32.gmra.mxu0 %vm788_vm4, %v737_v62 }
 0x238   :  { %1079 = vmatmul.msk.f32.gmra.mxu0 %vm788_vm4, %v738_v63 }
 0x285   :  { %v830_v23 = vpop.f32.mrf.mxu0 }
 0x286   :  { %v1564_v26 = vadd.f32 %v830_v23, %v751_v32 }
 0x288   :  { %v862_v41 = vmin.f32 %v1564_v26, 0.0  ;;  %vm854_vm14 = vcmp.gt.f32.partialorder %v1564_v26, 0.0 }
 0x28a   :  { %v870_v40 = vmul.f32 1.442695, %v862_v41 }
 0x28b   :  { %v851_v1 = vpop.f32.mrf.mxu2 }
 0x28c   :  { %v852_v2 = vadd.f32 %v851_v1, %v786_v27  ;;  %v906_v27 = vld [vmem:[%s1605_s2 + $0x60] sm:$0xff] }
 0x28d   :  { %v833_v3 = vpop.f32.mrf.mxu0 }
 0x28e   :  { %v869_v5 = vmin.f32 %v852_v2, 0.0  ;;  %vm861_vm5 = vcmp.gt.f32.partialorder %v852_v2, 0.0  ;;  %v1562_v30 = vadd.f32 %v833_v3, %v756_v28  ;;  %v919_v3 = vand.u32 127, %v918_v0 }
 0x290   :  { %v884_v58 = vmul.f32 1.442695, %v869_v5  ;;  %v863_v38 = vmin.f32 %v1562_v30, 0.0  ;;  %v924_v5 = vadd.s32 32, %v922_v53  ;;  %vm855_vm11 = vcmp.gt.f32.partialorder %v1562_v30, 0.0 }
 0x291   :  { %vm923_vm12 = vcmp.ge.s32.totalorder %v919_v3, %v922_v53 }
 0x292   :  { %1177 = vpow2.f32 %v884_v58  ;;  %v872_v43 = vmul.f32 1.442695, %v863_v38  ;;  %vm925_vm13 = vcmp.lt.s32.totalorder %v919_v3, %v924_v5 }
 0x293   :  { %vm926_vm15 = vmand %vm923_vm12, %vm925_vm13 }
 0x295   :  { %v836_v6 = vpop.f32.mrf.mxu0 }
 0x296   :  { %v1560_v22 = vadd.f32 %v836_v6, %v761_v20 }
 0x298   :  { %v1178_v7 = vpop.eup %1177  ;;  %v864_v39 = vmin.f32 %v1560_v22, 0.0  ;;  %vm856_vm10 = vcmp.gt.f32.partialorder %v1560_v22, 0.0 }
 0x299   :  { %v1088_v8 = vadd.f32 -1.0, %v1178_v7  ;;  %v905_v7 = vld [vmem:[%s1605_s2 + $0x58] sm:$0xff] }
 0x29a   :  { %v874_v4 = vmul.f32 1.442695, %v864_v39 }
 0x29b   :  { %v901_v9 = vsel %vm861_vm5, %v852_v2, %v1088_v8 }
 0x29c   :  { %v917_v51 = vmul.f32 %v909_v33, %v901_v9 }
 0x29d   :  { %v839_v10 = vpop.f32.mrf.mxu0 }
 0x29e   :  { %940 = vmatpush.msra.mxu1 %v917_v51  ;;  %v840_v48 = vadd.f32 %v839_v10, %v766_v16  ;;  %v904_v51 = vld [vmem:[%s1605_s2 + $0x50] sm:$0xff]  ;;  %v902_v16 = vld [vmem:[%s1605_s2 + $0x40] sm:$0xff] }
 0x2a0   :  { %v865_v25 = vmin.f32 %v840_v48, 0.0  ;;  %vm857_vm9 = vcmp.gt.f32.partialorder %v840_v48, 0.0 }
 0x2a2   :  { %v876_v34 = vmul.f32 1.442695, %v865_v25 }
 0x2a5   :  { %v842_v12 = vpop.f32.mrf.mxu0 }
 0x2a6   :  { %v843_v29 = vadd.f32 %v842_v12, %v771_v15  ;;  %v903_v12 = vld [vmem:[%s1605_s2 + $0x48] sm:$0xff] }
 0x2a8   :  { %v866_v24 = vmin.f32 %v843_v29, 0.0  ;;  %vm858_vm8 = vcmp.gt.f32.partialorder %v843_v29, 0.0 }
 0x2aa   :  { %v878_v36 = vmul.f32 1.442695, %v866_v24 }
 0x2ad   :  { %v845_v17 = vpop.f32.mrf.mxu0 }
 0x2ae   :  { %v846_v18 = vadd.f32 %v845_v17, %v776_v14 }
 0x2b0   :  { %v867_v19 = vmin.f32 %v846_v18, 0.0  ;;  %vm859_vm6 = vcmp.gt.f32.partialorder %v846_v18, 0.0 }
 0x2b2   :  { %v880_v31 = vmul.f32 1.442695, %v867_v19 }
 0x2b4   :  { %1179 = vpow2.f32 %v880_v31 }
 0x2b5   :  { %v848_v37 = vpop.f32.mrf.mxu0  ;;  %1181 = vpow2.f32 %v878_v36 }
 0x2b6   :  { %v849_v21 = vadd.f32 %v848_v37, %v781_v11  ;;  %1183 = vpow2.f32 %v876_v34 }
 0x2b8   :  { %v868_v13 = vmin.f32 %v849_v21, 0.0  ;;  %vm860_vm7 = vcmp.gt.f32.partialorder %v849_v21, 0.0 }
 0x2ba   :  { %v882_v42 = vmul.f32 1.442695, %v868_v13  ;;  %v1180_v35 = vpop.eup %1179 }
 0x2bb   :  { %v1182_v44 = vpop.eup %1181  ;;  %v1086_v47 = vadd.f32 -1.0, %v1180_v35 }
 0x2bc   :  { %1185 = vpow2.f32 %v882_v42  ;;  %v1184_v46 = vpop.eup %1183  ;;  %v1085_v50 = vadd.f32 -1.0, %v1182_v44 }
 0x2bd   :  { %1187 = vpow2.f32 %v874_v4  ;;  %v1084_v55 = vadd.f32 -1.0, %v1184_v46  ;;  %v899_v59 = vsel %vm859_vm6, %v846_v18, %v1086_v47  ;;  %v1201_v18 = vmov 0.0  }
 0x2be   :  { %1189 = vpow2.f32 %v872_v43  ;;  %v898_v23 = vsel %vm858_vm8, %v843_v29, %v1085_v50  ;;  %v915_v2 = vmul.f32 %v907_v60, %v899_v59 }
 0x2bf   :  { %1191 = vpow2.f32 %v870_v40  ;;  %v897_v6 = vsel %vm857_vm9, %v840_v48, %v1084_v55  ;;  %v914_v8 = vmul.f32 %v906_v27, %v898_v23  ;;  %v1089_v48 = vsel %vm926_vm15, 1.0, %v1201_v18 }
 0x2c0   :  { %v913_v10 = vmul.f32 %v905_v7, %v897_v6 }
 0x2c2   :  { %v1186_v49 = vpop.eup %1185 }
 0x2c3   :  { %v1087_v52 = vadd.f32 -1.0, %v1186_v49  ;;  %v1188_v54 = vpop.eup %1187 }
 0x2c4   :  { %v1190_v61 = vpop.eup %1189  ;;  %v1083_v63 = vadd.f32 -1.0, %v1188_v54 }
 0x2c5   :  { %v900_v56 = vsel %vm860_vm7, %v849_v21, %v1087_v52  ;;  %v1192_v1 = vpop.eup %1191  ;;  %v1082_v58 = vadd.f32 -1.0, %v1190_v61 }
 0x2c6   :  { %v916_v62 = vmul.f32 %v908_v57, %v900_v56  ;;  %v1081_v33 = vadd.f32 -1.0, %v1192_v1  ;;  %v896_v9 = vsel %vm856_vm10, %v1560_v22, %v1083_v63  ;;  %v957_v22 = vstv %s1606_s3 }
 0x2c7   :  { %v895_v11 = vsel %vm855_vm11, %v1562_v30, %v1082_v58  ;;  %v912_v14 = vmul.f32 %v904_v51, %v896_v9 }
 0x2c8   :  { %941 = vmatpush.msra.mxu1 %v916_v62  ;;  %v894_v15 = vsel %vm854_vm14, %v1564_v26, %v1081_v33  ;;  %v911_v17 = vmul.f32 %v903_v12, %v895_v11 }
 0x2c9   :  { %v910_v29 = vmul.f32 %v902_v16, %v894_v15 }
 0x2ca   :  { %942 = vmatpush.msra.mxu1 %v915_v2 }
 0x2cc   :  { %943 = vmatpush.msra.mxu1 %v914_v8 }
 0x2ce   :  { %944 = vmatpush.msra.mxu1 %v913_v10 }
 0x2d0   :  { %945 = vmatpush.msra.mxu1 %v912_v14 }
 0x2d2   :  { %946 = vmatpush.msra.mxu1 %v911_v17 }
 0x2d4   :  { %947 = vmatpush.msra.mxu1 %v910_v29 }
 0x2d5   :  { %1090 = vmatmul.msk.f32.vlgmr.msra.gmra.mxu1 %vm788_vm4, %v1089_v48 }
 0x352   :  { %v949_v19 = vpop.f32.mrf.mxu1 }
 0x353   :  { %v953_v20 = vsel %vm952_vm0, %v949_v19, 0.0 }
 0x354   :  { %954 = vadd.xlane.f32.xlu0 %v953_v20 }
 0x3c7   :  { %v955_v24 = vpop.xlane.xlu0 %954 }
 0x3c8   :  { %v958_v28 = vadd.f32 %v957_v22, %v955_v24 }
 0x3ca   :  { %960 = vst.msk [vmem:[%s1607_s4] sm:$0x3] %vm959_vm1, %v958_v28 }

</bundles_post_ra>
